<compile_context>
chip_gen: v7x
topology: tpu7x:2x2x1
jax: 0.10.0
libtpu: 0.0.40
codegen_flags: <defaults>
</compile_context>

<pallas_src>
import functools

import jax
import jax.numpy as jnp
from jax import lax
from jax.experimental import pallas as pl
from jax.experimental.pallas import tpu as pltpu

LANES = 128
MAX_BLOCK_ROWS = 2048   # 2048 x 128 f32 = 1 MiB per input tile


def _dice_bce_kernel(x_ref, t_ref, inter_ref, pt_ref, bce_ref,
                     *, valid_rows, needs_mask):
    c = pl.program_id(0)                 # TensorCore split ("parallel")
    i = pl.program_id(1)                 # row-block loop ("arbitrary")
    blocks_per_core = pl.num_programs(1)
    block_rows = x_ref.shape[0]

    @pl.when(i == 0)
    def _():
        inter_ref[...] = jnp.zeros_like(inter_ref)
        pt_ref[...] = jnp.zeros_like(pt_ref)
        bce_ref[...] = jnp.zeros_like(bce_ref)

    x = x_ref[...].astype(jnp.float32)
    t = t_ref[...].astype(jnp.float32)

    # One exp per element, shared between sigmoid and the BCE log term.
    e = jnp.exp(-jnp.abs(x))                       # EUP
    p = jnp.where(x >= 0, 1.0, e) / (1.0 + e)      # == sigmoid(x), exact
    # TODO(synk): on v7x, `* pl.reciprocal(1.0 + e, approx=True)` trims the EUP/VALU
    # path at the cost of ~2^-12 relative error in the dice term.
    # Stable BCE-with-logits: max(x,0) - x*t + log1p(exp(-|x|)).
    # Matches PyTorch's sigmoid+BCELoss except where sigmoid saturates in f32.
    bce = jnp.maximum(x, 0.0) - x * t + jnp.log1p(e)

    inter = p * t
    pt = p + t

    if needs_mask:
        # Logical (unclamped) first row of this block.  Rows at/after valid_rows
        # are Pallas OOB padding or a re-read of the clamped last block; zero
        # their contribution.  (Garbage producing NaN/Inf is fine: jnp.where
        # selects the 0.0 branch.)
        row0 = (c * blocks_per_core + i) * block_rows
        gr = row0 + lax.broadcasted_iota(jnp.int32, (block_rows, LANES), 0)
        valid = gr < valid_rows
        zero = jnp.float32(0.0)
        inter = jnp.where(valid, inter, zero)
        pt = jnp.where(valid, pt, zero)
        bce = jnp.where(valid, bce, zero)

    # Fold (block_rows, 128) -> (8, 128) with pure VPU adds (no XLU); the
    # cross-sublane/lane reduction runs once, on tiny arrays, in the wrapper.
    def fold(v):
        return v.reshape(block_rows // 8, 8, LANES).sum(axis=0)

    inter_ref[...] += fold(inter)
    pt_ref[...] += fold(pt)
    bce_ref[...] += fold(bce)


def _round_up(n, m):
    return -(-n // m) * m


def _sublane_multiple(dtype):
    size = jnp.dtype(dtype).itemsize
    if size >= 4:
        return 8
    if size == 2:
        return 16
    return 32


def dice_bce_loss(inputs, targets, smooth=1.0, max_block_rows=MAX_BLOCK_ROWS):
    """Pallas implementation of DiceBCELoss.forward. Returns a scalar f32."""
    x = inputs.reshape(-1)
    t = targets.reshape(-1)
    total = x.shape[0]

    # Pad only when the flat size is not lane-aligned (rare).  Neutral values
    # (logits -1e9, targets 0) contribute exactly zero to every partial sum.
    lane_padded = _round_up(total, LANES)
    if lane_padded != total:
        x = jnp.pad(x, (0, lane_padded - total), constant_values=-1e9)
        t = jnp.pad(t, (0, lane_padded - total), constant_values=0)
    rows = lane_padded // LANES
    x = x.reshape(rows, LANES)
    t = t.reshape(rows, LANES)

    sub = max(_sublane_multiple(x.dtype), _sublane_multiple(t.dtype))
    block_rows = min(max_block_rows, _round_up(rows, sub))
    block_rows = _round_up(block_rows, sub)
    num_blocks = pl.cdiv(rows, block_rows)
    num_cores = 2 if num_blocks >= 2 else 1         # v7x: one range per TensorCore
    blocks_per_core = pl.cdiv(num_blocks, num_cores)
    # Does any grid step cover rows past the real array (partial last block,
    # or an extra clamped step when num_blocks is odd)?
    needs_mask = (num_cores * blocks_per_core * block_rows) != rows
    clamp = num_cores * blocks_per_core > num_blocks

    def in_map(c, i, bpc=blocks_per_core, nb=num_blocks, clamp=clamp):
        b = c * bpc + i
        if clamp:
            b = jnp.minimum(b, nb - 1)   # re-read last real block; mask zeroes it
        return (b, 0)

    kernel = functools.partial(_dice_bce_kernel,
                               valid_rows=rows, needs_mask=needs_mask)

    part_shape = jax.ShapeDtypeStruct((num_cores, 8, LANES), jnp.float32)
    out_spec = pl.BlockSpec((None, 8, LANES), lambda c, i: (c, 0, 0))

    part_inter, part_pt, part_bce = pl.pallas_call(
        kernel,
        out_shape=(part_shape, part_shape, part_shape),
        grid_spec=pltpu.PrefetchScalarGridSpec(
            num_scalar_prefetch=0,
            grid=(num_cores, blocks_per_core),
            in_specs=[
                pl.BlockSpec((block_rows, LANES), in_map),
                pl.BlockSpec((block_rows, LANES), in_map),
            ],
            out_specs=[out_spec, out_spec, out_spec],
        ),
        compiler_params=pltpu.CompilerParams(
            dimension_semantics=("parallel", "arbitrary"),
            vmem_limit_bytes=32 * 1024 * 1024,
        ),
    )(x, t)

    # Tiny final combine (3 x num_cores x 8 x 128 floats) + scalar math.
    intersection = jnp.sum(part_inter)
    p_plus_t = jnp.sum(part_pt)
    bce_mean = jnp.sum(part_bce) / jnp.float32(total)
    dice_loss = 1.0 - (2.0 * intersection + smooth) / (p_plus_t + smooth)
    return bce_mean + dice_loss


def _reference(inputs, targets, smooth=1.0):
    # PyTorch semantics: sigmoid -> BCELoss (log clamped at -100, mean) + dice.
    p = jax.nn.sigmoid(inputs).reshape(-1).astype(jnp.float32)
    t = targets.reshape(-1).astype(jnp.float32)
    inter = jnp.sum(p * t)
    dice = 1.0 - (2.0 * inter + smooth) / (jnp.sum(p) + jnp.sum(t) + smooth)
    bce = jnp.mean(-(t * jnp.maximum(jnp.log(p), -100.0)
                     + (1.0 - t) * jnp.maximum(jnp.log(1.0 - p), -100.0)))
    return bce + dice


if __name__ == "__main__":
    key = jax.random.PRNGKey(0)
    k1, k2, k3, k4, k5, k6 = jax.random.split(key, 6)

    # 1) NCHW inputs, aligned flat size: single block, no masking.
    inputs = jax.random.normal(k1, (2, 4, 16, 16), dtype=jnp.float32)
    targets = jax.random.bernoulli(k2, p=0.5, shape=(2, 4, 16, 16)).astype(jnp.float32)
    loss = jax.block_until_ready(dice_bce_loss(inputs, targets, smooth=1.0))
    ref = _reference(inputs, targets, smooth=1.0)
    assert jnp.allclose(loss, ref, rtol=1e-5, atol=1e-4), (loss, ref)

    # 2) Non-lane-aligned size: exercises the neutral-value lane padding + row mask.
    inputs2 = jax.random.normal(k3, (2, 3, 7, 13), dtype=jnp.float32)
    targets2 = jax.random.bernoulli(k4, p=0.5, shape=(2, 3, 7, 13)).astype(jnp.float32)
    loss2 = jax.block_until_ready(dice_bce_loss(inputs2, targets2, smooth=1.0))
    ref2 = _reference(inputs2, targets2, smooth=1.0)
    assert jnp.allclose(loss2, ref2, rtol=1e-5, atol=1e-4), (loss2, ref2)

    # 3) Multi-block path with a small block size: 2-way "parallel" split,
    #    clamped index_map for the odd block count, and tail masking.
    inputs3 = jax.random.normal(k5, (2, 4, 40, 64), dtype=jnp.float32)
    targets3 = jax.random.bernoulli(k6, p=0.5, shape=(2, 4, 40, 64)).astype(jnp.float32)
    loss3 = jax.block_until_ready(dice_bce_loss(inputs3, targets3, smooth=1.0,
                                                max_block_rows=64))
    ref3 = _reference(inputs3, targets3, smooth=1.0)
    assert jnp.allclose(loss3, ref3, rtol=1e-5, atol=1e-4), (loss3, ref3)

    # 4) bf16 logits pass straight through (half the HBM bytes); f32 accumulation.
    inputs4 = inputs.astype(jnp.bfloat16)
    loss4 = jax.block_until_ready(dice_bce_loss(inputs4, targets, smooth=1.0))
    ref4 = _reference(inputs4.astype(jnp.float32), targets, smooth=1.0)
    assert jnp.allclose(loss4, ref4, rtol=1e-5, atol=1e-4), (loss4, ref4)

    print("KERNEL_OK")
</pallas_src>

<mosaic_0001>
module attributes {stable_mosaic.version = 11 : i64} {
  func.func @_dice_bce_kernel(%arg0: i32, %arg1: i32, %arg2: memref<16x128xf32, #tpu.memory_space<vmem>>, %arg3: memref<16x128xf32, #tpu.memory_space<vmem>>, %arg4: memref<1x8x128xf32, #tpu.memory_space<vmem>>, %arg5: memref<1x8x128xf32, #tpu.memory_space<vmem>>, %arg6: memref<1x8x128xf32, #tpu.memory_space<vmem>>) attributes {dimension_semantics = [#tpu.dimension_semantics<parallel>, #tpu.dimension_semantics<arbitrary>], iteration_bounds = array<i64: 1, 1>, scalar_prefetch = 0 : i64, scratch_operands = 0 : i64, tpu.core_type = #tpu.core_type<tc>, window_params = [{transform_indices = @transform_0, window_bounds = array<i64: 16, 128>}, {transform_indices = @transform_1, window_bounds = array<i64: 16, 128>}, {transform_indices = @transform_2, window_bounds = array<i64: 1, 8, 128>}, {transform_indices = @transform_3, window_bounds = array<i64: 1, 8, 128>}, {transform_indices = @transform_4, window_bounds = array<i64: 1, 8, 128>}]} {
    %c0_i32 = arith.constant 0 : i32
    %0 = arith.cmpi eq, %arg1, %c0_i32 : i32
    %1 = arith.extui %0 : i1 to i32
    %c0_i32_0 = arith.constant 0 : i32
    %2 = arith.cmpi ne, %1, %c0_i32_0 : i32
    scf.if %2 {
      %cst_29 = arith.constant 0.000000e+00 : f32
      %48 = vector.broadcast %cst_29 : f32 to vector<8x128xf32>
      %c0_30 = arith.constant 0 : index
      %c0_31 = arith.constant 0 : index
      %c0_32 = arith.constant 0 : index
      %49 = vector.load %arg4[%c0_30, %c0_31, %c0_32] : memref<1x8x128xf32, #tpu.memory_space<vmem>>, vector<1x8x128xf32>
      %50 = vector.shape_cast %49 : vector<1x8x128xf32> to vector<8x128xf32>
      %51 = vector.shape_cast %48 : vector<8x128xf32> to vector<1x8x128xf32>
      tpu.vector_store %arg4[%c0_30, %c0_31, %c0_32], %51 {strides = array<i32>} : memref<1x8x128xf32, #tpu.memory_space<vmem>>, vector<1x8x128xf32>,
      %cst_33 = arith.constant 0.000000e+00 : f32
      %52 = vector.broadcast %cst_33 : f32 to vector<8x128xf32>
      %c0_34 = arith.constant 0 : index
      %c0_35 = arith.constant 0 : index
      %c0_36 = arith.constant 0 : index
      %53 = vector.load %arg5[%c0_34, %c0_35, %c0_36] : memref<1x8x128xf32, #tpu.memory_space<vmem>>, vector<1x8x128xf32>
      %54 = vector.shape_cast %53 : vector<1x8x128xf32> to vector<8x128xf32>
      %55 = vector.shape_cast %52 : vector<8x128xf32> to vector<1x8x128xf32>
      tpu.vector_store %arg5[%c0_34, %c0_35, %c0_36], %55 {strides = array<i32>} : memref<1x8x128xf32, #tpu.memory_space<vmem>>, vector<1x8x128xf32>,
      %cst_37 = arith.constant 0.000000e+00 : f32
      %56 = vector.broadcast %cst_37 : f32 to vector<8x128xf32>
      %c0_38 = arith.constant 0 : index
      %c0_39 = arith.constant 0 : index
      %c0_40 = arith.constant 0 : index
      %57 = vector.load %arg6[%c0_38, %c0_39, %c0_40] : memref<1x8x128xf32, #tpu.memory_space<vmem>>, vector<1x8x128xf32>
      %58 = vector.shape_cast %57 : vector<1x8x128xf32> to vector<8x128xf32>
      %59 = vector.shape_cast %56 : vector<8x128xf32> to vector<1x8x128xf32>
      tpu.vector_store %arg6[%c0_38, %c0_39, %c0_40], %59 {strides = array<i32>} : memref<1x8x128xf32, #tpu.memory_space<vmem>>, vector<1x8x128xf32>,
    } else {
    }
    %c0 = arith.constant 0 : index
    %c0_1 = arith.constant 0 : index
    %3 = vector.load %arg2[%c0, %c0_1] : memref<16x128xf32, #tpu.memory_space<vmem>>, vector<16x128xf32>
    %c0_2 = arith.constant 0 : index
    %c0_3 = arith.constant 0 : index
    %4 = vector.load %arg3[%c0_2, %c0_3] : memref<16x128xf32, #tpu.memory_space<vmem>>, vector<16x128xf32>
    %5 = math.absf %3 : vector<16x128xf32>
    %cst = arith.constant 0.000000e+00 : f32
    %6 = vector.broadcast %cst : f32 to vector<16x128xf32>
    %7 = arith.subf %6, %5 : vector<16x128xf32>
    %8 = math.exp %7 : vector<16x128xf32>
    %cst_4 = arith.constant 0.000000e+00 : f32
    %9 = vector.broadcast %cst_4 : f32 to vector<16x128xf32>
    %10 = arith.cmpf oge, %3, %9 : vector<16x128xf32>
    %cst_5 = arith.constant 1.000000e+00 : f32
    %11 = vector.broadcast %cst_5 : f32 to vector<16x128xf32>
    %12 = arith.select %10, %11, %8 : vector<16x128xi1>, vector<16x128xf32>
    %cst_6 = arith.constant 1.000000e+00 : f32
    %13 = vector.broadcast %cst_6 : f32 to vector<16x128xf32>
    %14 = arith.addf %13, %8 : vector<16x128xf32>
    %15 = arith.divf %12, %14 : vector<16x128xf32>
    %cst_7 = arith.constant 0.000000e+00 : f32
    %16 = vector.broadcast %cst_7 : f32 to vector<16x128xf32>
    %17 = arith.maximumf %3, %16 : vector<16x128xf32>
    %18 = arith.mulf %3, %4 : vector<16x128xf32>
    %19 = arith.subf %17, %18 : vector<16x128xf32>
    %20 = math.log1p %8 : vector<16x128xf32>
    %21 = arith.addf %19, %20 : vector<16x128xf32>
    %22 = arith.mulf %15, %4 : vector<16x128xf32>
    %23 = arith.addf %15, %4 : vector<16x128xf32>
    %c0_8 = arith.constant 0 : index
    %c0_9 = arith.constant 0 : index
    %c0_10 = arith.constant 0 : index
    %24 = vector.load %arg4[%c0_8, %c0_9, %c0_10] : memref<1x8x128xf32, #tpu.memory_space<vmem>>, vector<1x8x128xf32>
    %25 = vector.shape_cast %24 : vector<1x8x128xf32> to vector<8x128xf32>
    %26 = vector.shape_cast %22 : vector<16x128xf32> to vector<2x8x128xf32>
    %cst_11 = arith.constant dense<0.000000e+00> : vector<8x128xf32>
    %27 = vector.multi_reduction <add>, %26, %cst_11 [0] : vector<2x8x128xf32> to vector<8x128xf32>
    %28 = arith.addf %25, %27 : vector<8x128xf32>
    %c0_12 = arith.constant 0 : index
    %c0_13 = arith.constant 0 : index
    %c0_14 = arith.constant 0 : index
    %29 = vector.load %arg4[%c0_12, %c0_13, %c0_14] : memref<1x8x128xf32, #tpu.memory_space<vmem>>, vector<1x8x128xf32>
    %30 = vector.shape_cast %29 : vector<1x8x128xf32> to vector<8x128xf32>
    %31 = vector.shape_cast %28 : vector<8x128xf32> to vector<1x8x128xf32>
    tpu.vector_store %arg4[%c0_12, %c0_13, %c0_14], %31 {strides = array<i32>} : memref<1x8x128xf32, #tpu.memory_space<vmem>>, vector<1x8x128xf32>,
    %c0_15 = arith.constant 0 : index
    %c0_16 = arith.constant 0 : index
    %c0_17 = arith.constant 0 : index
    %32 = vector.load %arg5[%c0_15, %c0_16, %c0_17] : memref<1x8x128xf32, #tpu.memory_space<vmem>>, vector<1x8x128xf32>
    %33 = vector.shape_cast %32 : vector<1x8x128xf32> to vector<8x128xf32>
    %34 = vector.shape_cast %23 : vector<16x128xf32> to vector<2x8x128xf32>
    %cst_18 = arith.constant dense<0.000000e+00> : vector<8x128xf32>
    %35 = vector.multi_reduction <add>, %34, %cst_18 [0] : vector<2x8x128xf32> to vector<8x128xf32>
    %36 = arith.addf %33, %35 : vector<8x128xf32>
    %c0_19 = arith.constant 0 : index
    %c0_20 = arith.constant 0 : index
    %c0_21 = arith.constant 0 : index
    %37 = vector.load %arg5[%c0_19, %c0_20, %c0_21] : memref<1x8x128xf32, #tpu.memory_space<vmem>>, vector<1x8x128xf32>
    %38 = vector.shape_cast %37 : vector<1x8x128xf32> to vector<8x128xf32>
    %39 = vector.shape_cast %36 : vector<8x128xf32> to vector<1x8x128xf32>
    tpu.vector_store %arg5[%c0_19, %c0_20, %c0_21], %39 {strides = array<i32>} : memref<1x8x128xf32, #tpu.memory_space<vmem>>, vector<1x8x128xf32>,
    %c0_22 = arith.constant 0 : index
    %c0_23 = arith.constant 0 : index
    %c0_24 = arith.constant 0 : index
    %40 = vector.load %arg6[%c0_22, %c0_23, %c0_24] : memref<1x8x128xf32, #tpu.memory_space<vmem>>, vector<1x8x128xf32>
    %41 = vector.shape_cast %40 : vector<1x8x128xf32> to vector<8x128xf32>
    %42 = vector.shape_cast %21 : vector<16x128xf32> to vector<2x8x128xf32>
    %cst_25 = arith.constant dense<0.000000e+00> : vector<8x128xf32>
    %43 = vector.multi_reduction <add>, %42, %cst_25 [0] : vector<2x8x128xf32> to vector<8x128xf32>
    %44 = arith.addf %41, %43 : vector<8x128xf32>
    %c0_26 = arith.constant 0 : index
    %c0_27 = arith.constant 0 : index
    %c0_28 = arith.constant 0 : index
    %45 = vector.load %arg6[%c0_26, %c0_27, %c0_28] : memref<1x8x128xf32, #tpu.memory_space<vmem>>, vector<1x8x128xf32>
    %46 = vector.shape_cast %45 : vector<1x8x128xf32> to vector<8x128xf32>
    %47 = vector.shape_cast %44 : vector<8x128xf32> to vector<1x8x128xf32>
    tpu.vector_store %arg6[%c0_26, %c0_27, %c0_28], %47 {strides = array<i32>} : memref<1x8x128xf32, #tpu.memory_space<vmem>>, vector<1x8x128xf32>,
    return
  }
  func.func @transform_0(%arg0: i32, %arg1: i32) -> (i32, i32) {
    %c1_i32 = arith.constant 1 : i32
    %0 = arith.muli %arg0, %c1_i32 : i32
    %1 = arith.addi %0, %arg1 : i32
    %c0_i32 = arith.constant 0 : i32
    %c0_i32_0 = arith.constant 0 : i32
    return %1, %c0_i32 : i32, i32
  }
  func.func @transform_1(%arg0: i32, %arg1: i32) -> (i32, i32) {
    %c1_i32 = arith.constant 1 : i32
    %0 = arith.muli %arg0, %c1_i32 : i32
    %1 = arith.addi %0, %arg1 : i32
    %c0_i32 = arith.constant 0 : i32
    %c0_i32_0 = arith.constant 0 : i32
    return %1, %c0_i32 : i32, i32
  }
  func.func @transform_2(%arg0: i32, %arg1: i32) -> (i32, i32, i32) {
    %c0_i32 = arith.constant 0 : i32
    %c0_i32_0 = arith.constant 0 : i32
    %c0_i32_1 = arith.constant 0 : i32
    return %arg0, %c0_i32, %c0_i32_0 : i32, i32, i32
  }
  func.func @transform_3(%arg0: i32, %arg1: i32) -> (i32, i32, i32) {
    %c0_i32 = arith.constant 0 : i32
    %c0_i32_0 = arith.constant 0 : i32
    %c0_i32_1 = arith.constant 0 : i32
    return %arg0, %c0_i32, %c0_i32_0 : i32, i32, i32
  }
  func.func @transform_4(%arg0: i32, %arg1: i32) -> (i32, i32, i32) {
    %c0_i32 = arith.constant 0 : i32
    %c0_i32_0 = arith.constant 0 : i32
    %c0_i32_1 = arith.constant 0 : i32
    return %arg0, %c0_i32, %c0_i32_0 : i32, i32, i32
  }
}

</mosaic_0001>

<bundles_post_ra>
// kernel: tpu_custom_call.1
= control target key start
LH: loop header
LB: loop body
LE: loop exit
PB: predicated region body
PF: predicated region fallthrough
CT: control target
= control target key end

     0   :  { %10 = vsyncpa [#allocation3], 0  ;;  %s420_s0 = inlined_call_operand.hbm [shape: f32[16,128], index: 0, kind: input, shape index: {}]   ;;  %s421_s1 = inlined_call_operand.hbm [shape: f32[16,128], index: 1, kind: input, shape index: {}]   ;;  %s422_s2 = inlined_call_operand.hbm [shape: f32[1,8,128], index: 2, kind: output, shape index: {0}]   ;;  %s423_s3 = inlined_call_operand.hbm [shape: f32[1,8,128], index: 3, kind: output, shape index: {1}]   ;;  %s424_s4 = inlined_call_operand.hbm [shape: f32[1,8,128], index: 4, kind: output, shape index: {2}]  }
   0x1   :  { %11 = vsyncpa [#allocation6], 0 }
   0x2   :  { %12 = vsyncpa [#allocation4], 0 }
   0x3   :  { %13 = vsyncpa [#allocation9], 0  ;;  %s308_s15 = smov [#allocation2]   ;;  %s190_s19 = scalar_lea.hbm %s420_s0, 256 }
   0x4   :  { %s23_s16 = sshll.u32 %s308_s15, 4  ;;  %p191_p0 = scmp.ne.s32.totalorder %s420_s0, %s190_s19  ;;  %s24_s16 = int_to_ptr.vmem [resolvable:$true] %s23_s16 }
   0x5   :  { %p194_p1 = scmp.lt.u32.totalorder %s190_s19, %s420_s0 }
   0x7   :  { %p196_p2 = pnand %p194_p1, %p191_p0 }
   0x9   :  { %199 = shalt.err (!%p196_p2)
}
   0xa   :  { %s200_s24 = scalar_lea.vmem %s24_s16, 256  ;;  %p205_p4 = scmp.lt.s32.totalorder %s24_s16, %s24_s16 }
   0xb   :  { %p201_p3 = scmp.ne.s32.totalorder %s24_s16, %s200_s24  ;;  %p206_p5 = scmp.lt.s32.totalorder %s200_s24, %s200_s24 }
   0xd   :  { %p207_p6 = por %p206_p5, %p205_p4 }
   0xf   :  { %p208_p7 = pnand %p207_p6, %p201_p3 }
  0x11   :  { %211 = shalt.err (!%p208_p7)
}
  0x12   :  { %s309_s25 = smov 128   ;;  %s310_s26 = smov 8  }
  0x13   :  { %29 = dma.hbm_to_vmem [thread:$0]  %s420_s0, 256, %s24_s16, [#allocation3], %s309_s25, %s309_s25, %s310_s26  }
  0x14   :  { %s311_s29 = smov [#allocation5]   ;;  %s212_s7 = scalar_lea.hbm %s421_s1, 256 }
  0x15   :  { %s39_s30 = sshll.u32 %s311_s29, 4  ;;  %p213_p8 = scmp.ne.s32.totalorder %s421_s1, %s212_s7  ;;  %s40_s30 = int_to_ptr.vmem [resolvable:$true] %s39_s30 }
  0x16   :  { %p216_p9 = scmp.lt.u32.totalorder %s212_s7, %s421_s1 }
  0x18   :  { %p218_p10 = pnand %p216_p9, %p213_p8 }
  0x1a   :  { %221 = shalt.err (!%p218_p10)
}
  0x1b   :  { %s222_s12 = scalar_lea.vmem %s40_s30, 256  ;;  %p227_p12 = scmp.lt.s32.totalorder %s40_s30, %s40_s30 }
  0x1c   :  { %p223_p11 = scmp.ne.s32.totalorder %s40_s30, %s222_s12  ;;  %p228_p13 = scmp.lt.s32.totalorder %s222_s12, %s222_s12 }
  0x1e   :  { %p229_p0 = por %p228_p13, %p227_p12 }
  0x20   :  { %p230_p1 = pnand %p229_p0, %p223_p11 }
  0x22   :  { %233 = shalt.err (!%p230_p1)
}
  0x23   :  { %45 = dma.hbm_to_vmem [thread:$0]  %s421_s1, 256, %s40_s30, [#allocation6], %s309_s25, %s309_s25, %s310_s26  }
  0x24   :  { %300 = dma.done.wait [#allocation3], 256  }
  0x25   :  { %301 = vsyncadd [#allocation3], 4294967040 }
  0x26   :  { %302 = dma.done.wait [#allocation6], 256  }
  0x27   :  { %303 = vsyncadd [#allocation6], 4294967040  ;;  %v63_v0 = vld [vmem:[#allocation2] sm:$0xff]  ;;  %v64_v1 = vld [vmem:[#allocation2 + $0x8] sm:$0xff]  ;;  %s312_s1 = smov [#allocation8]   ;;  %s313_s15 = smov [#allocation7]  }
  0x28   :  { %v67_v2 = vand.u32 2147483647, %v63_v0  ;;  %v68_v3 = vand.u32 2147483647, %v64_v1  ;;  %v65_v13 = vld [vmem:[#allocation5] sm:$0xff]  ;;  %v66_v15 = vld [vmem:[#allocation5 + $0x8] sm:$0xff] }
  0x29   :  { %vm75_vm0 = vcmp.ge.f32.partialorder %v63_v0, 0.0  ;;  %vm76_vm1 = vcmp.ge.f32.partialorder %v64_v1, 0.0  ;;  %v85_v16 = vmax.f32 %v63_v0, 0.0  ;;  %v86_v17 = vmax.f32 %v64_v1, 0.0  ;;  %s143_s14 = sshll.u32 %s312_s1, 4  ;;  %s133_s16 = sshll.u32 %s313_s15, 4  ;;  %s144_s14 = int_to_ptr.vmem [resolvable:$true] %s143_s14  ;;  %s370_s16 = int_to_ptr.vmem [resolvable:$true] %s133_s16 }
  0x2a   :  { %v69_v4 = vsub.f32 0.0, %v67_v2  ;;  %v70_v5 = vsub.f32 0.0, %v68_v3  ;;  %v87_v18 = vmul.f32 %v65_v13, %v63_v0  ;;  %v88_v21 = vmul.f32 %v66_v15, %v64_v1  ;;  %s314_s17 = smov [#allocation10]   ;;  %s234_s19 = scalar_lea.vmem %s144_s14, 128 }
  0x2b   :  { %s153_s18 = sshll.u32 %s314_s17, 4  ;;  %p235_p2 = scmp.ne.s32.totalorder %s144_s14, %s234_s19  ;;  %s372_s18 = int_to_ptr.vmem [resolvable:$true] %s153_s18 }
  0x2c   :  { %v71_v6 = vmul.f32 1.442695, %v69_v4  ;;  %v73_v7 = vmul.f32 1.442695, %v70_v5  ;;  %v89_v29 = vsub.f32 %v85_v16, %v87_v18  ;;  %v90_v33 = vsub.f32 %v86_v17, %v88_v21  ;;  %p239_p3 = scmp.lt.s32.totalorder %s144_s14, %s144_s14  ;;  %p240_p4 = scmp.lt.s32.totalorder %s234_s19, %s234_s19 }
  0x2e   :  { %178 = vpow2.f32 %v71_v6  ;;  %p241_p5 = por %p240_p4, %p239_p3 }
  0x2f   :  { %180 = vpow2.f32 %v73_v7 }
  0x30   :  { %p242_p6 = pnand %p241_p5, %p235_p2 }
  0x38   :  { %v179_v8 = vpop.eup %178 }
  0x39   :  { %v181_v9 = vpop.eup %180  ;;  %v79_v10 = vadd.f32 1.0, %v179_v8  ;;  %v94_v12 = vmul.f32 -0.5, %v179_v8  ;;  %v77_v20 = vsel %vm75_vm0, 1.0, %v179_v8  ;;  %v97_v22 = vand.u32 2147483647, %v179_v8 }
  0x3a   :  { %v80_v11 = vadd.f32 1.0, %v181_v9  ;;  %v103_v14 = vmul.f32 -0.5, %v181_v9  ;;  %v78_v24 = vsel %vm76_vm1, 1.0, %v181_v9  ;;  %v106_v25 = vand.u32 2147483647, %v181_v9 }
  0x3b   :  { %182 = vrcp.f32 %v79_v10  ;;  %v95_v19 = vadd.f32 1.0, %v94_v12  ;;  %vm364_vm2 = vcmp.lt.f32.partialorder %v97_v22, 0.0004427343 }
  0x3c   :  { %184 = vrcp.f32 %v80_v11  ;;  %v104_v23 = vadd.f32 1.0, %v103_v14  ;;  %vm107_vm3 = vcmp.lt.f32.partialorder %v106_v25, 0.0004427343 }
  0x3d   :  { %186 = vlog2.f32 %v79_v10  ;;  %v96_v30 = vmul.f32 %v179_v8, %v95_v19 }
  0x3e   :  { %188 = vlog2.f32 %v80_v11  ;;  %v105_v35 = vmul.f32 %v181_v9, %v104_v23 }
  0x45   :  { %v183_v26 = vpop.eup %182 }
  0x46   :  { %v185_v27 = vpop.eup %184  ;;  %v82_v28 = vmul.f32 %v183_v26, %v77_v20 }
  0x47   :  { %v187_v31 = vpop.eup %186  ;;  %v84_v32 = vmul.f32 %v185_v27, %v78_v24 }
  0x48   :  { %v189_v36 = vpop.eup %188  ;;  %v113_v37 = vadd.f32 %v82_v28, %v65_v13  ;;  %v111_v38 = vmul.f32 %v82_v28, %v65_v13  ;;  %v93_v39 = vmul.f32 0.6931472, %v187_v31 }
  0x49   :  { %v114_v40 = vadd.f32 %v84_v32, %v66_v15  ;;  %v112_v41 = vmul.f32 %v84_v32, %v66_v15  ;;  %v102_v42 = vmul.f32 0.6931472, %v189_v36 }
  0x4a   :  { %v99_v43 = vsel %vm364_vm2, %v96_v30, %v93_v39 }
  0x4b   :  { %v120_v44 = vadd.f32 %v114_v40, %v113_v37  ;;  %v116_v45 = vadd.f32 %v112_v41, %v111_v38  ;;  %v108_v46 = vsel %vm107_vm3, %v105_v35, %v102_v42  ;;  %v109_v47 = vadd.f32 %v99_v43, %v89_v29 }
  0x4c   :  { %v110_v48 = vadd.f32 %v108_v46, %v90_v33 }
  0x4d   :  { %122 = vst [vmem:[#allocation8] sm:$0xff] %v120_v44  ;;  %118 = vst [vmem:[#allocation7] sm:$0xff] %v116_v45 }
  0x4e   :  { %v124_v49 = vadd.f32 %v110_v48, %v109_v47 }
  0x4f   :  { %245 = shalt.err (!%p242_p6)
}
  0x50   :  { %s246_s22 = scalar_lea.hbm %s423_s3, 128 }
  0x51   :  { %p247_p7 = scmp.ne.s32.totalorder %s423_s3, %s246_s22  ;;  %p250_p8 = scmp.lt.u32.totalorder %s246_s22, %s423_s3 }
  0x53   :  { %p252_p9 = pnand %p250_p8, %p247_p7 }
  0x55   :  { %255 = shalt.err (!%p252_p9)
}
  0x56   :  { %146 = dma.vmem_to_hbm [thread:$0]  %s144_s14, 128, %s423_s3, [#allocation9]  }
  0x57   :  { %s256_s29 = scalar_lea.vmem %s370_s16, 128  ;;  %p261_p11 = scmp.lt.s32.totalorder %s370_s16, %s370_s16 }
  0x58   :  { %p257_p10 = scmp.ne.s32.totalorder %s370_s16, %s256_s29  ;;  %p262_p12 = scmp.lt.s32.totalorder %s256_s29, %s256_s29 }
  0x5a   :  { %p263_p13 = por %p262_p12, %p261_p11 }
  0x5c   :  { %p264_p0 = pnand %p263_p13, %p257_p10 }
  0x5e   :  { %267 = shalt.err (!%p264_p0)
}
  0x5f   :  { %s268_s6 = scalar_lea.hbm %s422_s2, 128 }
  0x60   :  { %p269_p1 = scmp.ne.s32.totalorder %s422_s2, %s268_s6  ;;  %p272_p2 = scmp.lt.u32.totalorder %s268_s6, %s422_s2 }
  0x62   :  { %p274_p3 = pnand %p272_p2, %p269_p1 }
  0x64   :  { %277 = shalt.err (!%p274_p3)
}
  0x65   :  { %136 = dma.vmem_to_hbm [thread:$0]  %s370_s16, 128, %s422_s2, [#allocation4]   ;;  %126 = vst [vmem:[#allocation10] sm:$0xff] %v124_v49 }
  0x66   :  { %s278_s12 = scalar_lea.vmem %s372_s18, 128  ;;  %p283_p5 = scmp.lt.s32.totalorder %s372_s18, %s372_s18 }
  0x67   :  { %p279_p4 = scmp.ne.s32.totalorder %s372_s18, %s278_s12  ;;  %p284_p6 = scmp.lt.s32.totalorder %s278_s12, %s278_s12 }
  0x69   :  { %p285_p7 = por %p284_p6, %p283_p5 }
  0x6b   :  { %p286_p8 = pnand %p285_p7, %p279_p4 }
  0x6d   :  { %289 = shalt.err (!%p286_p8)
}
  0x6e   :  { %s290_s1 = scalar_lea.hbm %s424_s4, 128 }
  0x6f   :  { %p291_p9 = scmp.ne.s32.totalorder %s424_s4, %s290_s1  ;;  %p294_p10 = scmp.lt.u32.totalorder %s290_s1, %s424_s4 }
  0x71   :  { %p296_p11 = pnand %p294_p10, %p291_p9 }
  0x73   :  { %299 = shalt.err (!%p296_p11)
}
  0x74   :  { %156 = dma.vmem_to_hbm [thread:$0]  %s372_s18, 128, %s424_s4, [#allocation9]  }
  0x75   :  { %304 = dma.done.wait [#allocation4], 128  }
  0x76   :  { %305 = vsyncadd [#allocation4], 4294967168 }
  0x77   :  { %306 = dma.done.wait [#allocation9], 256  }
  0x78   :  { %307 = vsyncadd [#allocation9], 4294967040 }
  0x79   :  { %166 = vsyncpa [#allocation3], 1 }
  0x7a   :  { %167 = vsyncpa [#allocation6], 1 }
  0x7b   :  { %168 = vsyncpa [#allocation4], 1 }
  0x7c   :  { %169 = vsyncpa [#allocation9], 1 }

</bundles_post_ra>
